<compile_context>
chip_gen: v5e
topology: v5e:2x2
jax: 0.10.0
libtpu: 0.0.40
codegen_flags: <defaults>
</compile_context>

<pallas_src>
import functools
from typing import NamedTuple, Optional

import jax
import jax.numpy as jnp
from jax.experimental import pallas as pl
from jax.experimental.pallas import tpu as pltpu


class GraphPositionEmbeddingOutput(NamedTuple):
    graph_position_embeds: jax.Array
    graph_position_features: Optional[jax.Array] = None
    orthonormal_features: Optional[jax.Array] = None
    embedding_ids: Optional[jax.Array] = None


def _gpse_kernel(ids_ref, wc_ref, gamma_ref, beta_ref, out_ref, *, eps, feature_dim):
    """One row tile: fused one-hot MXU gather+projection (single matmul) + LayerNorm."""
    bm = ids_ref.shape[0]
    two_f = wc_ref.shape[0]

    ids1 = ids_ref[:, 0:1]                                     # (bm, 1) int32
    ids2 = ids_ref[:, 1:2]

    # Stacked one-hot over the 2F contraction axis: first half selects row ids1,
    # second half selects row F + ids2.  Valid ids are < F so the halves never
    # collide.  NOTE: out-of-range ids produce an all-zero row -> LayerNorm emits
    # beta for that token (torch's gather would error/return garbage instead).
    iota = jax.lax.broadcasted_iota(jnp.int32, (bm, two_f), 1)
    oh = jnp.logical_or(iota == ids1, iota == ids2 + feature_dim)
    oh = oh.astype(wc_ref.dtype)                               # exact 0/1 in bf16/f32

    # x[r] = Wc[ids1[r]] + Wc[F + ids2[r]] : gather + projection in one MXU matmul.
    x = jnp.dot(oh, wc_ref[...], preferred_element_type=jnp.float32)   # (bm, E) f32

    # LayerNorm over the embedding axis in f32 (torch default eps=1e-5).
    mean = jnp.mean(x, axis=-1, keepdims=True)
    xc = x - mean
    var = jnp.mean(xc * xc, axis=-1, keepdims=True)
    inv = jax.lax.rsqrt(var + eps)
    y = xc * inv * gamma_ref[...].astype(jnp.float32) + beta_ref[...].astype(jnp.float32)
    out_ref[...] = y.astype(out_ref.dtype)


def _round_up(x, m):
    return (x + m - 1) // m * m


def _vmem_capacity_bytes():
    """Generation-aware VMEM capacity; falls back to a v7x-safe 64 MiB."""
    try:
        return int(pltpu.get_tpu_info().vmem_capacity_bytes)
    except Exception:
        return 64 * 1024 * 1024


def _footprint_bytes(br, two_f, emb, wc_bytes, out_bytes):
    """Corrected VMEM footprint for one row tile.

    BlockSpec inputs/outputs are double-buffered even with constant index maps;
    the (br, 2) int32 id tile pads its lane axis to 128.
    """
    weights = 2 * (two_f * emb * wc_bytes + 2 * 8 * emb * 4)   # Wc + gamma/beta (8-sublane pad)
    ids = 2 * br * 128 * 4                                     # (br, 2) int32, lane-padded
    out = 2 * br * emb * out_bytes                             # output tile (real itemsize)
    interm = br * (two_f * wc_bytes + 2 * emb * 4)             # one-hot + f32 x / y temps
    return weights + ids + out + interm


def _pick_block_rows(rows, two_f, emb, requested, wc_bytes, out_bytes, budget):
    rows8 = _round_up(rows, 8)
    br = _round_up(min(requested, rows8), 8)
    if rows8 >= 16:
        # Guarantee >= 2 grid steps so the "parallel" axis can shard across the
        # two TensorCores on v7x (no measurable cost on single-TC v5e/v6e).
        br = min(br, _round_up((rows + 1) // 2, 8))
    while br > 8 and _footprint_bytes(br, two_f, emb, wc_bytes, out_bytes) > budget:
        br = max(8, _round_up(br // 2, 8))
    return br, _footprint_bytes(br, two_f, emb, wc_bytes, out_bytes)


def graph_position_stable_embedding(
    graph_position_ids_1,      # (B, S) int
    graph_position_ids_2,      # (B, S) int
    identifier_ids,            # (B, S) 0/1 node markers
    w_orth,                    # (F, F) frozen orthonormal embedding table
    w_proj,                    # (E, 2F) projection weight (Linear, no bias)
    ln_weight,                 # (E,)
    ln_bias,                   # (E,)
    dtype=jnp.float32,
    *,
    eps=1e-5,
    embedding_ids=None,
    return_features=False,
    block_rows=2048,
    compute_dtype=jnp.bfloat16,    # MXU feed dtype (bf16 native on v5e/v6e/v7x)
):
    B, S = graph_position_ids_1.shape
    F = w_orth.shape[0]
    E = w_proj.shape[0]

    ids1 = graph_position_ids_1.astype(jnp.int32)
    ids2 = graph_position_ids_2.astype(jnp.int32)

    # Default path: embedding_ids = arange(max_node_cnt) per batch, so the gather
    # reads W_orth rows directly.  With explicit embedding_ids we remap through
    # them (== torch's two-level gather).
    # TODO(synk): use_random_id / adaptive_position_length branches (torch.rand +
    # sort id generation) and precomputed graph_position_features are not implemented.
    if embedding_ids is not None:
        emb = embedding_ids.astype(jnp.int32)
        ids1 = jnp.take_along_axis(emb, ids1, axis=1)
        ids2 = jnp.take_along_axis(emb, ids2, axis=1)

    # Fold the frozen orthonormal table into the projection:
    #   concat(W_orth[i1], W_orth[i2]) @ W_proj.T
    #     == onehot_2F(i1, i2) @ concat(W_orth @ Wp[:, :F].T, W_orth @ Wp[:, F:].T)
    w_orth32 = w_orth.astype(jnp.float32)
    w_proj32 = w_proj.astype(jnp.float32)
    wc = jnp.concatenate(
        [jnp.einsum("fk,ek->fe", w_orth32, w_proj32[:, :F]),
         jnp.einsum("fk,ek->fe", w_orth32, w_proj32[:, F:])],
        axis=0).astype(compute_dtype)                             # (2F, E)

    rows = B * S
    wc_bytes = jnp.dtype(compute_dtype).itemsize
    out_bytes = jnp.dtype(dtype).itemsize

    cap = _vmem_capacity_bytes()
    budget = min(int(cap * 0.55), 96 * 1024 * 1024)               # ~35 MiB v7x, ~70 MiB v5e/v6e
    br, footprint = _pick_block_rows(rows, 2 * F, E, block_rows,
                                     wc_bytes, out_bytes, budget)
    padded_rows = _round_up(rows, br)
    grid = (padded_rows // br,)
    pad = padded_rows - rows

    # Single packed id input: (rows, 2) int32 -> one DMA stream per step.
    ids = jnp.stack([ids1.reshape(rows), ids2.reshape(rows)], axis=1)
    ids = jnp.pad(ids, ((0, pad), (0, 0)))

    gamma2d = ln_weight.reshape(1, E).astype(jnp.float32)
    beta2d = ln_bias.reshape(1, E).astype(jnp.float32)

    vmem_limit = int(min(cap - 2 * 1024 * 1024,
                         max(16 * 1024 * 1024, footprint * 3 // 2)))

    out_padded = pl.pallas_call(
        functools.partial(_gpse_kernel, eps=eps, feature_dim=F),
        out_shape=jax.ShapeDtypeStruct((padded_rows, E), dtype),
        grid_spec=pltpu.PrefetchScalarGridSpec(
            num_scalar_prefetch=0,
            grid=grid,
            in_specs=[
                pl.BlockSpec((br, 2), lambda i: (i, 0)),       # packed ids1/ids2
                pl.BlockSpec((2 * F, E), lambda i: (0, 0)),    # fused (2F, E) weight, resident
                pl.BlockSpec((1, E), lambda i: (0, 0)),        # gamma
                pl.BlockSpec((1, E), lambda i: (0, 0)),        # beta
            ],
            out_specs=pl.BlockSpec((br, E), lambda i: (i, 0)),
        ),
        compiler_params=pltpu.CompilerParams(
            dimension_semantics=("parallel",),     # shards row tiles across TCs on v7x
            vmem_limit_bytes=vmem_limit,
        ),
        cost_estimate=pl.CostEstimate(
            flops=2 * rows * (2 * F) * E + 8 * rows * E,
            transcendentals=rows,
            bytes_accessed=(rows * 2 * 4
                            + (2 * F) * E * wc_bytes + 2 * E * 4
                            + rows * E * out_bytes),
        ),
    )(ids, wc, gamma2d, beta2d)

    embeds = out_padded[:rows].reshape(B, S, E)

    gp_features = None
    orth_features = None
    emb_ids_out = None
    if return_features:
        # Data-dependent max_node_cnt resolved host-side (shape-only use here).
        max_node_cnt = int(jnp.max(jnp.sum(identifier_ids.astype(jnp.int32), axis=1)))
        if embedding_ids is None:
            emb_ids_out = jnp.broadcast_to(
                jnp.arange(max_node_cnt, dtype=jnp.int32), (B, max_node_cnt))
        else:
            emb_ids_out = embedding_ids
        orth_features = jnp.take(w_orth, emb_ids_out, axis=0)        # (B, N, F)
        feat1 = jnp.take(w_orth, ids1, axis=0)
        feat2 = jnp.take(w_orth, ids2, axis=0)
        gp_features = jnp.concatenate([feat1, feat2], axis=-1)       # (B, S, 2F)

    return GraphPositionEmbeddingOutput(
        graph_position_embeds=embeds,
        graph_position_features=gp_features,
        orthonormal_features=orth_features,
        embedding_ids=emb_ids_out,
    )


def graph_position_stable_embedding_ref(ids1, ids2, w_orth, w_proj,
                                        ln_w, ln_b, dtype, eps=1e-5):
    """Pure-JAX reference matching the torch forward (default path)."""
    feat1 = w_orth[ids1]
    feat2 = w_orth[ids2]
    feats = jnp.concatenate([feat1, feat2], axis=-1)
    x = jnp.einsum("bsf,ef->bse", feats, w_proj)
    mean = jnp.mean(x, axis=-1, keepdims=True)
    var = jnp.mean((x - mean) ** 2, axis=-1, keepdims=True)
    y = (x - mean) * jax.lax.rsqrt(var + eps) * ln_w + ln_b
    return y.astype(dtype)


if __name__ == "__main__":
    key = jax.random.PRNGKey(0)
    k_orth, k_proj, k_ids1, k_ids2 = jax.random.split(key, 4)

    batch, seq = 2, 8
    feature_dim, embedding_dim = 64, 128    # embedding_dim lane-dense (x128)

    # Orthogonal table via QR of a random matrix (generate_orthogonal_matrix).
    w_orth, _ = jnp.linalg.qr(
        jax.random.normal(k_orth, (feature_dim, feature_dim), dtype=jnp.float32))
    w_orth = jnp.asarray(w_orth, dtype=jnp.float32)
    w_proj = 0.02 * jax.random.normal(
        k_proj, (embedding_dim, 2 * feature_dim), dtype=jnp.float32)
    ln_w = jnp.ones((embedding_dim,), jnp.float32)
    ln_b = jnp.zeros((embedding_dim,), jnp.float32)

    node_counts = jnp.array([6, 5], dtype=jnp.int32)
    identifier_ids = (jnp.arange(seq, dtype=jnp.int32)[None, :]
                      < node_counts[:, None]).astype(jnp.int32)
    max_nodes = int(node_counts.max())
    ids1 = jax.random.randint(k_ids1, (batch, seq), 0, max_nodes, dtype=jnp.int32)
    ids2 = jax.random.randint(k_ids2, (batch, seq), 0, max_nodes, dtype=jnp.int32)

    ref = graph_position_stable_embedding_ref(
        ids1, ids2, w_orth, w_proj, ln_w, ln_b, jnp.float32)

    # 1) f32 MXU path: tight numerical check against the pure-JAX reference.
    out_f32 = graph_position_stable_embedding(
        ids1, ids2, identifier_ids, w_orth, w_proj, ln_w, ln_b,
        dtype=jnp.float32, compute_dtype=jnp.float32, return_features=True)
    e32 = jax.block_until_ready(out_f32.graph_position_embeds)
    assert e32.shape == (batch, seq, embedding_dim)
    assert out_f32.graph_position_features.shape == (batch, seq, 2 * feature_dim)
    assert out_f32.orthonormal_features.shape == (batch, max_nodes, feature_dim)
    assert jnp.allclose(e32, ref, atol=1e-3, rtol=1e-3), "f32 kernel mismatch vs reference"

    # 2) Default bf16 MXU fast path (v5e/v6e/v7x native): bf16-rounding tolerance.
    out_bf16 = graph_position_stable_embedding(
        ids1, ids2, identifier_ids, w_orth, w_proj, ln_w, ln_b, dtype=jnp.float32)
    ebf = jax.block_until_ready(out_bf16.graph_position_embeds)
    assert ebf.shape == (batch, seq, embedding_dim)
    assert jnp.allclose(ebf, ref, atol=3e-2, rtol=3e-2), "bf16 kernel mismatch vs reference"

    print("KERNEL_OK")
</pallas_src>

<mosaic_0001>
module attributes {stable_mosaic.version = 11 : i64} {
  func.func @_gpse_kernel(%arg0: i32, %arg1: memref<8x2xi32, #tpu.memory_space<vmem>>, %arg2: memref<128x128xf32, #tpu.memory_space<vmem>>, %arg3: memref<1x128xf32, #tpu.memory_space<vmem>>, %arg4: memref<1x128xf32, #tpu.memory_space<vmem>>, %arg5: memref<8x128xf32, #tpu.memory_space<vmem>>) attributes {dimension_semantics = [#tpu.dimension_semantics<parallel>], iteration_bounds = array<i64: 2>, scalar_prefetch = 0 : i64, scratch_operands = 0 : i64, tpu.core_type = #tpu.core_type<tc>, window_params = [{transform_indices = @transform_0, window_bounds = array<i64: 8, 2>}, {pipeline_mode = #tpu.pipeline_mode<synchronous>, transform_indices = @transform_1, window_bounds = array<i64: 128, 128>}, {pipeline_mode = #tpu.pipeline_mode<synchronous>, transform_indices = @transform_2, window_bounds = array<i64: 1, 128>}, {pipeline_mode = #tpu.pipeline_mode<synchronous>, transform_indices = @transform_3, window_bounds = array<i64: 1, 128>}, {transform_indices = @transform_4, window_bounds = array<i64: 8, 128>}]} {
    %c0 = arith.constant 0 : index
    %c0_0 = arith.constant 0 : index
    %0 = vector.load %arg1[%c0, %c0_0] : memref<8x2xi32, #tpu.memory_space<vmem>>, vector<8x1xi32>
    %c0_1 = arith.constant 0 : index
    %c1 = arith.constant 1 : index
    %1 = vector.load %arg1[%c0_1, %c1] : memref<8x2xi32, #tpu.memory_space<vmem>>, vector<8x1xi32>
    %2 = tpu.iota {dimensions = array<i32: 1>} : vector<8x128xi32>
    %3 = vector.broadcast %0 : vector<8x1xi32> to vector<8x128xi32>
    %4 = arith.cmpi eq, %2, %3 : vector<8x128xi32>
    %c64_i32 = arith.constant 64 : i32
    %5 = vector.broadcast %c64_i32 : i32 to vector<8x1xi32>
    %6 = arith.addi %1, %5 : vector<8x1xi32>
    %7 = vector.broadcast %6 : vector<8x1xi32> to vector<8x128xi32>
    %8 = arith.cmpi eq, %2, %7 : vector<8x128xi32>
    %9 = arith.ori %4, %8 : vector<8x128xi1>
    %10 = arith.extui %9 : vector<8x128xi1> to vector<8x128xi32>
    %11 = arith.sitofp %10 : vector<8x128xi32> to vector<8x128xf32>
    %c0_2 = arith.constant 0 : index
    %c0_3 = arith.constant 0 : index
    %12 = vector.load %arg2[%c0_2, %c0_3] : memref<128x128xf32, #tpu.memory_space<vmem>>, vector<128x128xf32>
    %cst = arith.constant dense<0.000000e+00> : vector<8x128xf32>
    %13 = tpu.matmul %11, %12, %cst {dimension_numbers = #tpu.dot_dimension_numbers<[1], [0], [0], [1], [0, 0, 1, 1], [], []>} : vector<8x128xf32>, vector<128x128xf32>, vector<8x128xf32> -> vector<8x128xf32>
    %cst_4 = arith.constant dense<0.000000e+00> : vector<8xf32>
    %14 = vector.multi_reduction <add>, %13, %cst_4 [1] : vector<8x128xf32> to vector<8xf32>
    %15 = vector.shape_cast %14 : vector<8xf32> to vector<8x1xf32>
    %cst_5 = arith.constant 1.280000e+02 : f32
    %16 = vector.broadcast %cst_5 : f32 to vector<8x1xf32>
    %17 = arith.divf %15, %16 : vector<8x1xf32>
    %18 = vector.broadcast %17 : vector<8x1xf32> to vector<8x128xf32>
    %19 = arith.subf %13, %18 : vector<8x128xf32>
    %20 = arith.mulf %19, %19 : vector<8x128xf32>
    %cst_6 = arith.constant dense<0.000000e+00> : vector<8xf32>
    %21 = vector.multi_reduction <add>, %20, %cst_6 [1] : vector<8x128xf32> to vector<8xf32>
    %22 = vector.shape_cast %21 : vector<8xf32> to vector<8x1xf32>
    %cst_7 = arith.constant 1.280000e+02 : f32
    %23 = vector.broadcast %cst_7 : f32 to vector<8x1xf32>
    %24 = arith.divf %22, %23 : vector<8x1xf32>
    %cst_8 = arith.constant 9.99999974E-6 : f32
    %25 = vector.broadcast %cst_8 : f32 to vector<8x1xf32>
    %26 = arith.addf %24, %25 : vector<8x1xf32>
    %27 = math.rsqrt %26 : vector<8x1xf32>
    %28 = vector.broadcast %27 : vector<8x1xf32> to vector<8x128xf32>
    %29 = arith.mulf %19, %28 : vector<8x128xf32>
    %c0_9 = arith.constant 0 : index
    %c0_10 = arith.constant 0 : index
    %30 = vector.load %arg3[%c0_9, %c0_10] : memref<1x128xf32, #tpu.memory_space<vmem>>, vector<1x128xf32>
    %31 = vector.broadcast %30 : vector<1x128xf32> to vector<8x128xf32>
    %32 = arith.mulf %29, %31 : vector<8x128xf32>
    %c0_11 = arith.constant 0 : index
    %c0_12 = arith.constant 0 : index
    %33 = vector.load %arg4[%c0_11, %c0_12] : memref<1x128xf32, #tpu.memory_space<vmem>>, vector<1x128xf32>
    %34 = vector.broadcast %33 : vector<1x128xf32> to vector<8x128xf32>
    %35 = arith.addf %32, %34 : vector<8x128xf32>
    %c0_13 = arith.constant 0 : index
    %c0_14 = arith.constant 0 : index
    %36 = vector.load %arg5[%c0_13, %c0_14] : memref<8x128xf32, #tpu.memory_space<vmem>>, vector<8x128xf32>
    tpu.vector_store %arg5[%c0_13, %c0_14], %35 {strides = array<i32>} : memref<8x128xf32, #tpu.memory_space<vmem>>, vector<8x128xf32>,
    return
  }
  func.func @transform_0(%arg0: i32) -> (i32, i32) {
    %c0_i32 = arith.constant 0 : i32
    %c0_i32_0 = arith.constant 0 : i32
    return %arg0, %c0_i32 : i32, i32
  }
  func.func @transform_1(%arg0: i32) -> (i32, i32) {
    %c0_i32 = arith.constant 0 : i32
    %c0_i32_0 = arith.constant 0 : i32
    %c0_i32_1 = arith.constant 0 : i32
    return %c0_i32, %c0_i32_0 : i32, i32
  }
  func.func @transform_2(%arg0: i32) -> (i32, i32) {
    %c0_i32 = arith.constant 0 : i32
    %c0_i32_0 = arith.constant 0 : i32
    %c0_i32_1 = arith.constant 0 : i32
    return %c0_i32, %c0_i32_0 : i32, i32
  }
  func.func @transform_3(%arg0: i32) -> (i32, i32) {
    %c0_i32 = arith.constant 0 : i32
    %c0_i32_0 = arith.constant 0 : i32
    %c0_i32_1 = arith.constant 0 : i32
    return %c0_i32, %c0_i32_0 : i32, i32
  }
  func.func @transform_4(%arg0: i32) -> (i32, i32) {
    %c0_i32 = arith.constant 0 : i32
    %c0_i32_0 = arith.constant 0 : i32
    return %arg0, %c0_i32 : i32, i32
  }
}

</mosaic_0001>

<bundles_post_ra>
// kernel: tpu_custom_call.1
= control target key start
LH: loop header
LB: loop body
LE: loop exit
PB: predicated region body
PF: predicated region fallthrough
CT: control target
= control target key end

     0   :  { %9 = vsyncpa [#allocation3], 0  ;;  %s695_s0 = inlined_call_operand.vmem [shape: s32[16,2], index: 0, kind: input, shape index: {}]   ;;  %s696_s1 = inlined_call_operand.hbm [shape: f32[128,128], index: 1, kind: input, shape index: {}]   ;;  %s697_s2 = inlined_call_operand.vmem [shape: f32[1,128], index: 2, kind: input, shape index: {}]   ;;  %s698_s3 = inlined_call_operand.vmem [shape: f32[1,128], index: 3, kind: input, shape index: {}]   ;;  %s699_s4 = inlined_call_operand.hbm [shape: f32[16,128], index: 4, kind: output, shape index: {}]  }
   0x1   :  { %10 = vsyncpa [#allocation4], 0 }
   0x2   :  { %12 = vsyncpa [#allocation4 + $0x1], 0  ;;  %s594_s15 = smov 0   ;;  %s596_s16 = smov 0  }
   0x3   :  { %s598_s17 = smov 0   ;;  %s600_s18 = smov 0  }
   0x4 LB: > { %s615_s19 = sadd.s32 4294967295, %s560_s18   ;;  %s386_s20 = sadd.s32 4294967294, %s560_s18   ;;  %s560_s18 = sphi %s600_s18, %s705_s18   ;;  %s556_s17 = sphi %s598_s17, %s704_s17   ;;  %s552_s16 = sphi %s596_s16, %s703_s16   ;;  %s548_s15 = sphi %s594_s15, %s702_s15  }
   0x5   : > { %s619_s21 = sadd.s32 1, %s560_s18   ;;  %s114_s22 = sadd.s32 1, %s556_s17 }
   0x6   : > { %s111_s23 = ssub.s32 %s560_s18, %s619_s21  ;;  %p124_p0 = scmp.ne.s32.totalorder %s556_s17, %s552_s16 }
   0x7   : > { %p112_p1 = scmp.eq.s32.totalorder %s111_s23, 0  ;;  %p125_p2 = scmp.eq.s32.totalorder %s615_s19, 1 }
   0x8   : > { %p130_p3 = scmp.ne.s32.totalorder %s552_s16, %s548_s15  ;;  %p131_p4 = scmp.eq.s32.totalorder %s386_s20, 1 }
   0x9   : > { %s630_s24 = scalar_select %p112_p1, %s556_s17, %s114_s22  }
   0xa   : > { %p632_p5 = por %p125_p2, %p124_p0  ;;  %p636_p6 = por %p131_p4, %p130_p3 }
   0xb   : > { %p387_p7 = scmp.ge.s32.totalorder %s560_s18, 1  ;;  %p138_p8 = scmp.lt.s32.totalorder %s560_s18, 3 }
   0xc   : > { %p414_p9 = scmp.eq.s32.totalorder %s615_s19, 0  ;;  %s149_s29 = sshll.u32 %s696_s1, 4  ;;  %s150_s29 = int_to_ptr.hbm [resolvable:$true] %s149_s29 }
   0xd   : > { %p139_p10 = pnand %p387_p7, %p138_p8  ;;  %s562_s30 = smov [#allocation2]  }
   0xe   : > { %s151_s5 = sshll.u32 %s562_s30, 4  ;;  %s563_s6 = smov 128   ;;  %s152_s5 = int_to_ptr.vmem [resolvable:$true] %s151_s5 }
   0xf   : > { %p406_p11 = pneg %p139_p10  ;;  %s564_s7 = smov 8  }
  0x10   : > { %180 = sbr.rel (%p139_p10) target bundleno = 550 (0x226), region = 36 }
  0x11   : > { %p407_p12 = pnand %p414_p9, %p406_p11 }
  0x13   : > { %409 = dma.hbm_to_vmem [thread:$0]  (!%p407_p12), %s150_s29, 2048, %s152_s5, [#allocation3], %s563_s6, %s563_s6, %s564_s7  }
  0x15   : > { %539 = dma.done.wait (%p414_p9), [#allocation3], 2048  }
  0x16   : > { %541 = vsyncadd (%p414_p9), [#allocation3], 4294965248  ;;  %p206_p13 = scmp.lt.s32.totalorder %s615_s19, 1  ;;  %v565_v0 = vmov 0   ;;  %v240_v2 = vld [vmem:[#allocation2 + $0x78] sm:$0xff]  ;;  %v239_v3 = vld [vmem:[#allocation2 + $0x70] sm:$0xff]  ;;  %v211_v21 = vlaneseq }
  0x17   : > { %456 = vset.pattern.permute.xlu0 %v565_v0  ;;  %241 = vmatpush.msra.mxu0 %v240_v2  ;;  %v238_v4 = vld [vmem:[#allocation2 + $0x68] sm:$0xff]  ;;  %v237_v5 = vld [vmem:[#allocation2 + $0x60] sm:$0xff]  ;;  %v236_v7 = vld [vmem:[#allocation2 + $0x58] sm:$0xff]  ;;  %v566_v9 = vmov 1   ;;  %v567_v24 = vmov 1.0   ;;  %v568_v26 = vmov 128.0  }
  0x18   : > { %s207_s8 = scalar_select %p206_p13, %s615_s19, 1  ;;  %v235_v8 = vld [vmem:[#allocation2 + $0x50] sm:$0xff]  ;;  %v234_v10 = vld [vmem:[#allocation2 + $0x48] sm:$0xff]  ;;  %v233_v11 = vld [vmem:[#allocation2 + $0x40] sm:$0xff]  ;;  %v212_v22 = vand.u32 127, %v211_v21  ;;  %460 = vrcp.f32 %v568_v26 }
  0x19   : > { %242 = vmatpush.msra.mxu0 %v239_v3  ;;  %v232_v12 = vld [vmem:[#allocation2 + $0x38] sm:$0xff]  ;;  %v231_v13 = vld [vmem:[#allocation2 + $0x30] sm:$0xff]  ;;  %v230_v14 = vld [vmem:[#allocation2 + $0x28] sm:$0xff]  ;;  %s203_s13 = sand.u32 1, %s552_s16   ;;  %s397_s20 = sshll.u32 %s615_s19, 3 }
  0x1a   : > { %s393_s9 = sshll.u32 %s207_s8, 3  ;;  %v229_v15 = vld [vmem:[#allocation2 + $0x20] sm:$0xff]  ;;  %v228_v16 = vld [vmem:[#allocation2 + $0x18] sm:$0xff]  ;;  %v227_v17 = vld [vmem:[#allocation2 + $0x10] sm:$0xff]  ;;  %s392_s14 = sshll.u32 %s203_s13, 3 }
  0x1b   : > { %s209_s12 = scalar_lea.vmem %s695_s0, %s393_s9  ;;  %243 = vmatpush.msra.mxu0 %v238_v4  ;;  %v226_v18 = vld [vmem:[#allocation2 + $0x8] sm:$0xff]  ;;  %v225_v19 = vld [vmem:[#allocation2] sm:$0xff]  ;;  %s310_s29 = scalar_lea.hbm %s699_s4, %s397_s20 }
  0x1c   : > { %v210_v1 = vld [vmem:[%s209_s12] sm:$0xff]  ;;  %s205_s6 = scalar_lea.vmem [#allocation5], %s392_s14  ;;  %s314_s7 = sshll.u32 %s310_s29, 4  ;;  %s315_s7 = int_to_ptr.hbm [resolvable:$true] %s314_s7 }
  0x1d   : > { %214 = vperm.xlu0 %456, %v210_v1   ;;  %v217_v6 = vadd.s32 64, %v210_v1  ;;  %244 = vmatpush.msra.mxu0 %v237_v5  ;;  %v458_v46 = vld [vmem:[%s697_s2] ss:$0 sm:$0xff]  ;;  %s312_s19 = sshll.u32 %s205_s6, 4  ;;  %s300_s8 = scalar_lea.sflag [#allocation4], %s203_s13  ;;  %s313_s19 = int_to_ptr.vmem [resolvable:$true] %s312_s19 }
  0x1e   : > { %v461_v27 = vpop.eup %460  ;;  %v459_v49 = vld [vmem:[%s698_s3] ss:$0 sm:$0xff]  ;;  %s508_s9 = sshra.s32 %s315_s7, 4  ;;  %s514_s20 = scalar_lea.hbm %s699_s4, 16  ;;  %s509_s9 = int_to_ptr.hbm [resolvable:$true] %s508_s9 }
  0x1f   : > { %245 = vmatpush.msra.mxu0 %v236_v7  ;;  %v264_v28 = vmul.f32 128.0, %v461_v27  ;;  %vm268_vm3 = vweird.f32 %v461_v27  ;;  %s510_s10 = scalar_lea.hbm %s509_s9, 8  ;;  %p515_p3 = scmp.lt.s32.totalorder %s509_s9, %s699_s4 }
  0x20   : > { %p511_p0 = scmp.ne.s32.totalorder %s509_s9, %s510_s10  ;;  %p516_p4 = scmp.lt.s32.totalorder %s514_s20, %s510_s10 }
  0x21   : > { %246 = vmatpush.msra.mxu0 %v235_v8  ;;  %v265_v29 = vsub.f32 1.0, %v264_v28 }
  0x22   : > { %p512_p1 = pnand %p511_p0, %p632_p5  ;;  %p517_p7 = por %p516_p4, %p515_p3 }
  0x23   : > { %247 = vmatpush.msra.mxu0 %v234_v10  ;;  %v266_v30 = vmul.f32 %v461_v27, %v265_v29 }
  0x24   : > { %p513_p2 = pneg %p512_p1 }
  0x25   : > { %457 = vset.pattern.permute.xlu0 %v566_v9  ;;  %248 = vmatpush.msra.mxu0 %v233_v11  ;;  %v267_v31 = vadd.f32 %v461_v27, %v266_v30 }
  0x26   : > { %219 = vperm.xlu0 %457, %v217_v6   ;;  %p518_p8 = pnand %p517_p7, %p513_p2 }
  0x27   : > { %249 = vmatpush.msra.mxu0 %v232_v12  ;;  %v269_v32 = vsel %vm268_vm3, %v461_v27, %v267_v31 }
  0x29   : > { %250 = vmatpush.msra.mxu0 %v231_v13 }
  0x2b   : > { %251 = vmatpush.msra.mxu0 %v230_v14 }
  0x2d   : > { %252 = vmatpush.msra.mxu0 %v229_v15 }
  0x2f   : > { %253 = vmatpush.msra.mxu0 %v228_v16 }
  0x31   : > { %254 = vmatpush.msra.mxu0 %v227_v17 }
  0x33   : > { %255 = vmatpush.msra.mxu0 %v226_v18 }
  0x35   : > { %256 = vmatpush.msra.mxu0 %v225_v19 }
  0x8f   : > { %v215_v20 = vpop.permute.xlu0 %214 }
  0x90   : > { %vm216_vm0 = vcmp.eq.s32.totalorder %v212_v22, %v215_v20 }
  0x98   : > { %v220_v23 = vpop.permute.xlu0 %219 }
  0x99   : > { %vm221_vm1 = vcmp.eq.s32.totalorder %v212_v22, %v220_v23 }
  0x9a   : > { %vm222_vm2 = vmor %vm216_vm0, %vm221_vm1 }
  0x9b   : > { %395 = vmatmul.msk.f32.vlgmr.msra.gmra.mxu0 %vm222_vm2, %v567_v24 }
 0x118   : > { %v258_v25 = vpop.f32.mrf.mxu0 }
 0x119   : > { %261 = vadd.xlane.f32.xlu1 %v258_v25 }
 0x18c   : > { %v262_v33 = vpop.xlane.xlu1 %261 }
 0x18d   : > { %v270_v34 = vmul.f32 %v269_v32, %v262_v33 }
 0x18f   : > { %v271_v35 = vsub.f32 %v258_v25, %v270_v34 }
 0x191   : > { %v272_v36 = vmul.f32 %v271_v35, %v271_v35 }
 0x193   : > { %273 = vadd.xlane.f32.xlu1 %v272_v36 }
 0x206   : > { %v274_v37 = vpop.xlane.xlu1 %273 }
 0x207   : > { %v275_v38 = vmul.f32 %v274_v37, %v269_v32 }
 0x209   : > { %v276_v39 = vadd.f32 1e-05, %v275_v38 }
 0x20b   : > { %462 = vrsqrt.f32 %v276_v39  ;;  %vm283_vm5 = vweird.f32 %v276_v39 }
 0x211   : > { %v463_v40 = vpop.eup %462 }
 0x212   : > { %v278_v41 = vmul.f32 %v463_v40, %v276_v39  ;;  %vm284_vm4 = vweird.f32 %v463_v40 }
 0x213   : > { %vm285_vm6 = vmor %vm283_vm5, %vm284_vm4 }
 0x214   : > { %v279_v42 = vmul.f32 %v463_v40, %v278_v41 }
 0x216   : > { %v280_v43 = vmul.f32 0.5, %v279_v42 }
 0x218   : > { %v281_v44 = vsub.f32 1.5, %v280_v43 }
 0x21a   : > { %v282_v45 = vmul.f32 %v463_v40, %v281_v44 }
 0x21c   : > { %v286_v47 = vsel %vm285_vm6, %v463_v40, %v282_v45 }
 0x21d   : > { %v287_v48 = vmul.f32 %v286_v47, %v271_v35 }
 0x21f   : > { %v292_v50 = vmul.f32 %v458_v46, %v287_v48 }
 0x221   : > { %v297_v51 = vadd.f32 %v459_v49, %v292_v50 }
 0x223   : > { %298 = vst [vmem:[%s205_s6] sm:$0xff] %v297_v51 }
 0x224   : > { %521 = shalt.err (!%p518_p8)
}
 0x225   : > { %404 = dma.vmem_to_hbm [thread:$0]  (%p632_p5), %s313_s19, 128, %s315_s7, %s300_s8  }
 0x226 PF: > { %p416_p9 = scmp.ge.s32.totalorder %s560_s18, 2  ;;  %s326_s13 = sand.u32 1, %s548_s15  }
 0x227   : > { %s327_s23 = scalar_lea.sflag [#allocation4], %s326_s13 }
 0x228   : > { %p411_p10 = pnand %p416_p9, %p636_p6 }
 0x22a   : > { %p412_p11 = pneg %p411_p10 }
 0x22c   : > { %543 = dma.done.wait (%p412_p11), %s327_s23, 128  }
 0x22d   : > { %545 = vsyncadd (%p412_p11), %s327_s23, 4294967168  ;;  %p15_p12 = scmp.ge.s32.totalorder %s619_s21, 4   ;;  %s702_s15 = smov %s552_s16 }
 0x22e   : > { %s703_s16 = smov %s556_s17  ;;  %s704_s17 = smov %s630_s24 }
 0x22f   : > { %s705_s18 = smov %s619_s21  ;;  %17 = sbr.rel (!%p15_p12) target bundleno = 4 (0x4), region = 76 }
 0x234   :  { %333 = vsyncpa [#allocation3], 1 }
 0x235   :  { %335 = vsyncpa [#allocation3 + $0x1], 1 }
 0x236   :  { %336 = vsyncpa [#allocation4], 1 }
 0x237   :  { %338 = vsyncpa [#allocation4 + $0x1], 1 }

</bundles_post_ra>
